<compile_context>
chip_gen: v7x
topology: tpu7x:2x2x1
jax: 0.10.0
libtpu: 0.0.40
codegen_flags: <defaults>
</compile_context>

<pallas_src>
import functools

import jax
import jax.numpy as jnp
from jax.experimental import pallas as pl
from jax.experimental.pallas import tpu as pltpu

N_HIDDEN = 100          # logical hidden width (matches PyTorch module)
H_PAD = 128             # lane/MXU aligned padded hidden width
IN_PAD = 8              # fc1 input (state(2) + t(1)) padded to one sublane group


def _round_up(n, m):
    return ((n + m - 1) // m) * m


def _mlp_kernel(x_ref,
                w1_ref, b1_ref,
                w2_ref, b2_ref,
                w3_ref, b3_ref,
                w4_ref, b4_ref,
                o_ref):
    """Fused transposed 4-layer MLP on one (*, TILE_B) batch tile.

    Batch maps to lanes.  x_ref is an (8, TILE_B) slab: rows 0-1 = state^T,
    row 2 = t^T, rows 3-7 = 0 (torch.hstack fused).  Weights are resident
    (constant index_map) and stored as (out, in); every activation is
    (H, TILE_B), i.e. lane-dense.
    """
    x = x_ref[...]                                                  # (8, TB) f32

    # fc1: K=8 MXU matmul in f32 (tiny), fuses the hstack.
    h = jnp.dot(w1_ref[...], x, preferred_element_type=jnp.float32) + b1_ref[...]
    h = jnp.maximum(h, 0.0)

    # fc2/fc3: bf16 operands, f32 MXU accumulation; bias/ReLU stay f32.
    h = jnp.dot(w2_ref[...], h.astype(jnp.bfloat16),
                preferred_element_type=jnp.float32) + b2_ref[...]
    h = jnp.maximum(h, 0.0)
    h = jnp.dot(w3_ref[...], h.astype(jnp.bfloat16),
                preferred_element_type=jnp.float32) + b3_ref[...]
    h = jnp.maximum(h, 0.0)

    # fc4: (2,128) @ (128, TB) -> lane-dense (2, TB) output tile.
    out = jnp.dot(w4_ref[...], h.astype(jnp.bfloat16),
                  preferred_element_type=jnp.float32) + b4_ref[...]
    o_ref[...] = out.astype(o_ref.dtype)


@functools.partial(jax.jit, static_argnames=("tile_b",))
def net_forward(state, t, padded_params, tile_b=4096):
    """state: (B, 2) f32, t: (B, 1) f32 -> (B, 2) f32."""
    w1t, b1t, w2t, b2t, w3t, b3t, w4t, b4t = padded_params
    B = state.shape[0]
    out_dim = w4t.shape[0]

    # Batch tile = lane dim: multiple of 128.  Clamp so that whenever possible
    # the grid has >= 2 steps (v7x: 2 TensorCores shard the "parallel" axis).
    half = _round_up(-(-B // 2), 128)
    tb = max(128, min(_round_up(tile_b, 128), half))
    b_pad = _round_up(B, tb)

    # Build the fused, transposed input slab (single lane-dense DMA stream).
    x_slab = jnp.zeros((IN_PAD, b_pad), jnp.float32)
    x_slab = x_slab.at[0:2, :B].set(state.T)
    x_slab = x_slab.at[2:3, :B].set(t.T)

    grid = (b_pad // tb,)

    def batch_map(i):
        return (0, i)

    def const_map(i):
        return (0, 0)

    # Weights/biases use constant block indices -> fetched once, stay resident.
    in_specs = [
        pl.BlockSpec((IN_PAD, tb), batch_map),          # x slab
        pl.BlockSpec((H_PAD, IN_PAD), const_map),       # w1^T (f32)
        pl.BlockSpec((H_PAD, 1), const_map),            # b1
        pl.BlockSpec((H_PAD, H_PAD), const_map),        # w2^T (bf16)
        pl.BlockSpec((H_PAD, 1), const_map),            # b2
        pl.BlockSpec((H_PAD, H_PAD), const_map),        # w3^T (bf16)
        pl.BlockSpec((H_PAD, 1), const_map),            # b3
        pl.BlockSpec((out_dim, H_PAD), const_map),      # w4^T (bf16)
        pl.BlockSpec((out_dim, 1), const_map),          # b4
    ]
    out_spec = pl.BlockSpec((out_dim, tb), batch_map)

    flops_per_col = 2 * (IN_PAD * H_PAD + 2 * H_PAD * H_PAD + H_PAD * out_dim)
    weight_bytes = (2 * H_PAD * H_PAD * 2 + H_PAD * IN_PAD * 4
                    + out_dim * H_PAD * 2 + (3 * H_PAD + out_dim) * 4)
    cost = pl.CostEstimate(
        flops=flops_per_col * b_pad,
        transcendentals=0,
        bytes_accessed=(IN_PAD + out_dim) * 4 * b_pad + weight_bytes,
    )

    out = pl.pallas_call(
        _mlp_kernel,
        out_shape=jax.ShapeDtypeStruct((out_dim, b_pad), jnp.float32),
        grid=grid,
        in_specs=in_specs,
        out_specs=out_spec,
        compiler_params=pltpu.CompilerParams(
            dimension_semantics=("parallel",),          # v7x: shard batch over 2 TCs
            vmem_limit_bytes=32 * 1024 * 1024,          # safe on v5e/v6e/v7x
        ),
        cost_estimate=cost,
    )(x_slab, w1t, b1t, w2t, b2t, w3t, b3t, w4t, b4t)

    return out[:, :B].T


def init_params(key, n_hidden=N_HIDDEN):
    """PyTorch-style init U(-1/sqrt(fan_in), 1/sqrt(fan_in)).

    Logical params: weights stored (in, out) (transposed vs nn.Linear), biases (1, out).
    """
    dims = [(3, n_hidden), (n_hidden, n_hidden), (n_hidden, n_hidden), (n_hidden, 2)]
    params = []
    for fan_in, fan_out in dims:
        key, kw, kb = jax.random.split(key, 3)
        bound = 1.0 / jnp.sqrt(jnp.float32(fan_in))
        w = jax.random.uniform(kw, (fan_in, fan_out), jnp.float32, -bound, bound)
        b = jax.random.uniform(kb, (1, fan_out), jnp.float32, -bound, bound)
        params += [w, b]
    return tuple(params)


def pad_params(params, h_pad=H_PAD, in_pad=IN_PAD):
    """Transpose, zero-pad hidden width to h_pad, cast matmul weights to bf16.

    Zero padding keeps padded hidden rows exactly 0 through ReLU; padded
    columns of w2/w3/w4 contribute nothing.  fc1 weight stays f32 (input
    fidelity, trivial cost); fc2/fc3/fc4 weights are bf16 (f32 accumulation
    happens on the MXU).
    """
    w1, b1, w2, b2, w3, b3, w4, b4 = params
    n_h = w1.shape[1]
    n_out = w4.shape[1]

    w1t = jnp.zeros((h_pad, in_pad), jnp.float32).at[:n_h, :3].set(w1.T)
    b1t = jnp.zeros((h_pad, 1), jnp.float32).at[:n_h, 0].set(b1[0])
    w2t = jnp.zeros((h_pad, h_pad), jnp.float32).at[:n_h, :n_h].set(w2.T).astype(jnp.bfloat16)
    b2t = jnp.zeros((h_pad, 1), jnp.float32).at[:n_h, 0].set(b2[0])
    w3t = jnp.zeros((h_pad, h_pad), jnp.float32).at[:n_h, :n_h].set(w3.T).astype(jnp.bfloat16)
    b3t = jnp.zeros((h_pad, 1), jnp.float32).at[:n_h, 0].set(b3[0])
    w4t = jnp.zeros((n_out, h_pad), jnp.float32).at[:, :n_h].set(w4.T).astype(jnp.bfloat16)
    b4t = b4.T.astype(jnp.float32)                      # (2, 1)
    return (w1t, b1t, w2t, b2t, w3t, b3t, w4t, b4t)


def net_forward_ref(state, t, params):
    """Pure-JAX f32 reference (unpadded params) for correctness checking."""
    w1, b1, w2, b2, w3, b3, w4, b4 = params
    x = jnp.concatenate([state, t], axis=1)
    x = jax.nn.relu(x @ w1 + b1)
    x = jax.nn.relu(x @ w2 + b2)
    x = jax.nn.relu(x @ w3 + b3)
    return x @ w4 + b4


if __name__ == "__main__":
    key = jax.random.PRNGKey(0)
    k_params, k_state, k_t = jax.random.split(key, 3)

    params = init_params(k_params, n_hidden=N_HIDDEN)
    padded = pad_params(params)

    # bf16 matmul operands (f32 accumulation) -> relax tolerance vs f32 ref.
    ATOL = RTOL = 2e-2

    # Case 1: tiny batch, default tile (single grid step; exercises lane padding).
    batch = 8
    state = jax.random.normal(k_state, (batch, 2), jnp.float32)
    t = jax.random.normal(k_t, (batch, 1), jnp.float32)
    out = jax.block_until_ready(net_forward(state, t, padded))
    ref = net_forward_ref(state, t, params)
    assert out.shape == (batch, 2), out.shape
    assert jnp.allclose(out, ref, atol=ATOL, rtol=RTOL), (out, ref)

    # Case 2: batch not divisible by the tile -> multi-step grid + pad/slice,
    # resident weights across steps.
    batch2 = 300
    state2 = jax.random.normal(jax.random.PRNGKey(1), (batch2, 2), jnp.float32)
    t2 = jax.random.normal(jax.random.PRNGKey(2), (batch2, 1), jnp.float32)
    out2 = jax.block_until_ready(net_forward(state2, t2, padded, tile_b=128))
    ref2 = net_forward_ref(state2, t2, params)
    assert out2.shape == (batch2, 2), out2.shape
    assert jnp.allclose(out2, ref2, atol=ATOL, rtol=RTOL), (out2, ref2)

    print("KERNEL_OK")
</pallas_src>

<mosaic_0001>
module attributes {stable_mosaic.version = 11 : i64} {
  func.func @_mlp_kernel(%arg0: i32, %arg1: memref<8x128xf32, #tpu.memory_space<vmem>>, %arg2: memref<128x8xf32, #tpu.memory_space<vmem>>, %arg3: memref<128x1xf32, #tpu.memory_space<vmem>>, %arg4: memref<128x128xbf16, #tpu.memory_space<vmem>>, %arg5: memref<128x1xf32, #tpu.memory_space<vmem>>, %arg6: memref<128x128xbf16, #tpu.memory_space<vmem>>, %arg7: memref<128x1xf32, #tpu.memory_space<vmem>>, %arg8: memref<2x128xbf16, #tpu.memory_space<vmem>>, %arg9: memref<2x1xf32, #tpu.memory_space<vmem>>, %arg10: memref<2x128xf32, #tpu.memory_space<vmem>>) attributes {dimension_semantics = [#tpu.dimension_semantics<parallel>], iteration_bounds = array<i64: 1>, scalar_prefetch = 0 : i64, scratch_operands = 0 : i64, tpu.core_type = #tpu.core_type<tc>, window_params = [{transform_indices = @transform_0, window_bounds = array<i64: 8, 128>}, {pipeline_mode = #tpu.pipeline_mode<synchronous>, transform_indices = @transform_1, window_bounds = array<i64: 128, 8>}, {pipeline_mode = #tpu.pipeline_mode<synchronous>, transform_indices = @transform_2, window_bounds = array<i64: 128, 1>}, {pipeline_mode = #tpu.pipeline_mode<synchronous>, transform_indices = @transform_3, window_bounds = array<i64: 128, 128>}, {pipeline_mode = #tpu.pipeline_mode<synchronous>, transform_indices = @transform_4, window_bounds = array<i64: 128, 1>}, {pipeline_mode = #tpu.pipeline_mode<synchronous>, transform_indices = @transform_5, window_bounds = array<i64: 128, 128>}, {pipeline_mode = #tpu.pipeline_mode<synchronous>, transform_indices = @transform_6, window_bounds = array<i64: 128, 1>}, {pipeline_mode = #tpu.pipeline_mode<synchronous>, transform_indices = @transform_7, window_bounds = array<i64: 2, 128>}, {pipeline_mode = #tpu.pipeline_mode<synchronous>, transform_indices = @transform_8, window_bounds = array<i64: 2, 1>}, {transform_indices = @transform_9, window_bounds = array<i64: 2, 128>}]} {
    %c0 = arith.constant 0 : index
    %c0_0 = arith.constant 0 : index
    %0 = vector.load %arg1[%c0, %c0_0] : memref<8x128xf32, #tpu.memory_space<vmem>>, vector<8x128xf32>
    %c0_1 = arith.constant 0 : index
    %c0_2 = arith.constant 0 : index
    %1 = vector.load %arg2[%c0_1, %c0_2] : memref<128x8xf32, #tpu.memory_space<vmem>>, vector<128x8xf32>
    %cst = arith.constant dense<0.000000e+00> : vector<128x128xf32>
    %2 = tpu.matmul %1, %0, %cst {dimension_numbers = #tpu.dot_dimension_numbers<[1], [0], [0], [1], [0, 0, 1, 1], [], []>} : vector<128x8xf32>, vector<8x128xf32>, vector<128x128xf32> -> vector<128x128xf32>
    %c0_3 = arith.constant 0 : index
    %c0_4 = arith.constant 0 : index
    %3 = vector.load %arg3[%c0_3, %c0_4] : memref<128x1xf32, #tpu.memory_space<vmem>>, vector<128x1xf32>
    %4 = vector.broadcast %3 : vector<128x1xf32> to vector<128x128xf32>
    %5 = arith.addf %2, %4 : vector<128x128xf32>
    %cst_5 = arith.constant 0.000000e+00 : f32
    %6 = vector.broadcast %cst_5 : f32 to vector<128x128xf32>
    %7 = arith.maximumf %5, %6 : vector<128x128xf32>
    %c0_6 = arith.constant 0 : index
    %c0_7 = arith.constant 0 : index
    %8 = vector.load %arg4[%c0_6, %c0_7] : memref<128x128xbf16, #tpu.memory_space<vmem>>, vector<128x128xbf16>
    %9 = arith.truncf %7 : vector<128x128xf32> to vector<128x128xbf16>
    %cst_8 = arith.constant dense<0.000000e+00> : vector<128x128xf32>
    %10 = tpu.matmul %8, %9, %cst_8 {dimension_numbers = #tpu.dot_dimension_numbers<[1], [0], [0], [1], [0, 0, 1, 1], [], []>} : vector<128x128xbf16>, vector<128x128xbf16>, vector<128x128xf32> -> vector<128x128xf32>
    %c0_9 = arith.constant 0 : index
    %c0_10 = arith.constant 0 : index
    %11 = vector.load %arg5[%c0_9, %c0_10] : memref<128x1xf32, #tpu.memory_space<vmem>>, vector<128x1xf32>
    %12 = vector.broadcast %11 : vector<128x1xf32> to vector<128x128xf32>
    %13 = arith.addf %10, %12 : vector<128x128xf32>
    %cst_11 = arith.constant 0.000000e+00 : f32
    %14 = vector.broadcast %cst_11 : f32 to vector<128x128xf32>
    %15 = arith.maximumf %13, %14 : vector<128x128xf32>
    %c0_12 = arith.constant 0 : index
    %c0_13 = arith.constant 0 : index
    %16 = vector.load %arg6[%c0_12, %c0_13] : memref<128x128xbf16, #tpu.memory_space<vmem>>, vector<128x128xbf16>
    %17 = arith.truncf %15 : vector<128x128xf32> to vector<128x128xbf16>
    %cst_14 = arith.constant dense<0.000000e+00> : vector<128x128xf32>
    %18 = tpu.matmul %16, %17, %cst_14 {dimension_numbers = #tpu.dot_dimension_numbers<[1], [0], [0], [1], [0, 0, 1, 1], [], []>} : vector<128x128xbf16>, vector<128x128xbf16>, vector<128x128xf32> -> vector<128x128xf32>
    %c0_15 = arith.constant 0 : index
    %c0_16 = arith.constant 0 : index
    %19 = vector.load %arg7[%c0_15, %c0_16] : memref<128x1xf32, #tpu.memory_space<vmem>>, vector<128x1xf32>
    %20 = vector.broadcast %19 : vector<128x1xf32> to vector<128x128xf32>
    %21 = arith.addf %18, %20 : vector<128x128xf32>
    %cst_17 = arith.constant 0.000000e+00 : f32
    %22 = vector.broadcast %cst_17 : f32 to vector<128x128xf32>
    %23 = arith.maximumf %21, %22 : vector<128x128xf32>
    %c0_18 = arith.constant 0 : index
    %c0_19 = arith.constant 0 : index
    %24 = vector.load %arg8[%c0_18, %c0_19] : memref<2x128xbf16, #tpu.memory_space<vmem>>, vector<2x128xbf16>
    %25 = arith.truncf %23 : vector<128x128xf32> to vector<128x128xbf16>
    %cst_20 = arith.constant dense<0.000000e+00> : vector<2x128xf32>
    %26 = tpu.matmul %24, %25, %cst_20 {dimension_numbers = #tpu.dot_dimension_numbers<[1], [0], [0], [1], [0, 0, 1, 1], [], []>} : vector<2x128xbf16>, vector<128x128xbf16>, vector<2x128xf32> -> vector<2x128xf32>
    %c0_21 = arith.constant 0 : index
    %c0_22 = arith.constant 0 : index
    %27 = vector.load %arg9[%c0_21, %c0_22] : memref<2x1xf32, #tpu.memory_space<vmem>>, vector<2x1xf32>
    %28 = vector.broadcast %27 : vector<2x1xf32> to vector<2x128xf32>
    %29 = arith.addf %26, %28 : vector<2x128xf32>
    %c0_23 = arith.constant 0 : index
    %c0_24 = arith.constant 0 : index
    %30 = vector.load %arg10[%c0_23, %c0_24] : memref<2x128xf32, #tpu.memory_space<vmem>>, vector<2x128xf32>
    tpu.vector_store %arg10[%c0_23, %c0_24], %29 {strides = array<i32>} : memref<2x128xf32, #tpu.memory_space<vmem>>, vector<2x128xf32>,
    return
  }
  func.func @transform_0(%arg0: i32) -> (i32, i32) {
    %c0_i32 = arith.constant 0 : i32
    %c0_i32_0 = arith.constant 0 : i32
    return %c0_i32, %arg0 : i32, i32
  }
  func.func @transform_1(%arg0: i32) -> (i32, i32) {
    %c0_i32 = arith.constant 0 : i32
    %c0_i32_0 = arith.constant 0 : i32
    %c0_i32_1 = arith.constant 0 : i32
    return %c0_i32, %c0_i32_0 : i32, i32
  }
  func.func @transform_2(%arg0: i32) -> (i32, i32) {
    %c0_i32 = arith.constant 0 : i32
    %c0_i32_0 = arith.constant 0 : i32
    %c0_i32_1 = arith.constant 0 : i32
    return %c0_i32, %c0_i32_0 : i32, i32
  }
  func.func @transform_3(%arg0: i32) -> (i32, i32) {
    %c0_i32 = arith.constant 0 : i32
    %c0_i32_0 = arith.constant 0 : i32
    %c0_i32_1 = arith.constant 0 : i32
    return %c0_i32, %c0_i32_0 : i32, i32
  }
  func.func @transform_4(%arg0: i32) -> (i32, i32) {
    %c0_i32 = arith.constant 0 : i32
    %c0_i32_0 = arith.constant 0 : i32
    %c0_i32_1 = arith.constant 0 : i32
    return %c0_i32, %c0_i32_0 : i32, i32
  }
  func.func @transform_5(%arg0: i32) -> (i32, i32) {
    %c0_i32 = arith.constant 0 : i32
    %c0_i32_0 = arith.constant 0 : i32
    %c0_i32_1 = arith.constant 0 : i32
    return %c0_i32, %c0_i32_0 : i32, i32
  }
  func.func @transform_6(%arg0: i32) -> (i32, i32) {
    %c0_i32 = arith.constant 0 : i32
    %c0_i32_0 = arith.constant 0 : i32
    %c0_i32_1 = arith.constant 0 : i32
    return %c0_i32, %c0_i32_0 : i32, i32
  }
  func.func @transform_7(%arg0: i32) -> (i32, i32) {
    %c0_i32 = arith.constant 0 : i32
    %c0_i32_0 = arith.constant 0 : i32
    %c0_i32_1 = arith.constant 0 : i32
    return %c0_i32, %c0_i32_0 : i32, i32
  }
  func.func @transform_8(%arg0: i32) -> (i32, i32) {
    %c0_i32 = arith.constant 0 : i32
    %c0_i32_0 = arith.constant 0 : i32
    %c0_i32_1 = arith.constant 0 : i32
    return %c0_i32, %c0_i32_0 : i32, i32
  }
  func.func @transform_9(%arg0: i32) -> (i32, i32) {
    %c0_i32 = arith.constant 0 : i32
    %c0_i32_0 = arith.constant 0 : i32
    return %c0_i32, %arg0 : i32, i32
  }
}

</mosaic_0001>

<bundles_post_ra>
// kernel: net_forward.1
= control target key start
LH: loop header
LB: loop body
LE: loop exit
PB: predicated region body
PF: predicated region fallthrough
CT: control target
= control target key end

     0   :  { %vm146_vm0 = vcmask 64512   ;;  %v1199_v0 = vmov 0   ;;  %vm1201_vm1 = vmmov 0   ;;  %s1529_s2 = inlined_call_operand.vmem [shape: f32[128,1], index: 2, kind: input, shape index: {}]   ;;  %s1530_s0 = inlined_call_operand.vmem [shape: f32[8,128], index: 0, kind: input, shape index: {}]   ;;  %s1531_s1 = inlined_call_operand.vmem [shape: f32[128,8], index: 1, kind: input, shape index: {}]   ;;  %s1532_s4 = inlined_call_operand.vmem [shape: f32[128,1], index: 4, kind: input, shape index: {}]   ;;  %s1533_s6 = inlined_call_operand.vmem [shape: f32[128,1], index: 6, kind: input, shape index: {}]   ;;  %s1534_s8 = inlined_call_operand.vmem [shape: f32[2,1], index: 8, kind: input, shape index: {}]   ;;  %s1535_s3 = inlined_call_operand.vmem [shape: bf16[128,128], index: 3, kind: input, shape index: {}]   ;;  %s1536_s5 = inlined_call_operand.vmem [shape: bf16[128,128], index: 5, kind: input, shape index: {}]   ;;  %s1537_s7 = inlined_call_operand.vmem [shape: bf16[2,128], index: 7, kind: input, shape index: {}]   ;;  %s1538_s9 = inlined_call_operand.vmem [shape: f32[2,128], index: 9, kind: output, shape index: {}]  }
   0x1   :  { %1182 = vset.pattern.permute.xlu1 %v1199_v0  ;;  %1181 = vset.pattern.permute.xlu0 %v1199_v0  ;;  %v52_v1 = vld [vmem:[%s1529_s2 + $0x10] sm:$0xff]  ;;  %v50_v2 = vld [vmem:[%s1529_s2] sm:$0xff]  ;;  %v35_v5 = vld [vmem:[%s1531_s1 + $0x8] sm:$0xff] }
   0x2   :  { %v33_v3 = vld [vmem:[%s1530_s0] sm:$0xff]  ;;  %78 = vperm.xlu1 %1182, %v52_v1   ;;  %68 = vperm.xlu0 %1181, %v50_v2   ;;  %v53_v6 = vld [vmem:[%s1529_s2 + $0x18] sm:$0xff]  ;;  %v51_v7 = vld [vmem:[%s1529_s2 + $0x8] sm:$0xff] }
   0x3   :  { %v34_v4 = vld [vmem:[%s1531_s1] sm:$0xff]  ;;  %1068 = vmatprep.subr.mxu0 %v33_v3  ;;  %v36_v8 = vld [vmem:[%s1531_s1 + $0x10] sm:$0xff]  ;;  %v37_v9 = vld [vmem:[%s1531_s1 + $0x18] sm:$0xff] }
   0x4   :  { %1070 = vmatprep.mubr.msk.f32.mxu0 %vm146_vm0, %v34_v4  ;;  %1069 = vmatpush3.msra.mxu0 %v33_v3  ;;  %v55_v10 = vld [vmem:[%s1529_s2 + $0x28] sm:$0xff]  ;;  %v54_v11 = vld [vmem:[%s1529_s2 + $0x20] sm:$0xff]  ;;  %v57_v14 = vld [vmem:[%s1529_s2 + $0x38] sm:$0xff] }
   0x5   :  { %1071 = vmatmul.mubr.msk.f32.vlgmr.msra.gmra.mrb[0].mxu0 %vm146_vm0, %v35_v5  ;;  %v38_v12 = vld [vmem:[%s1531_s1 + $0x20] sm:$0xff]  ;;  %v39_v13 = vld [vmem:[%s1531_s1 + $0x28] sm:$0xff]  ;;  %v56_v15 = vld [vmem:[%s1529_s2 + $0x30] sm:$0xff] }
   0x6   :  { %83 = vperm.xlu1 %1182, %v53_v6   ;;  %73 = vperm.xlu0 %1181, %v51_v7   ;;  %v40_v16 = vld [vmem:[%s1531_s1 + $0x30] sm:$0xff]  ;;  %v41_v17 = vld [vmem:[%s1531_s1 + $0x38] sm:$0xff]  ;;  %v59_v18 = vld [vmem:[%s1529_s2 + $0x48] sm:$0xff] }
   0x7   :  { %1073 = vmatprep.mubr.msk.f32.mxu0 %vm146_vm0, %v36_v8  ;;  %v58_v19 = vld [vmem:[%s1529_s2 + $0x40] sm:$0xff]  ;;  %v43_v21 = vld [vmem:[%s1531_s1 + $0x48] sm:$0xff]  ;;  %v61_v22 = vld [vmem:[%s1529_s2 + $0x58] sm:$0xff] }
   0x8   :  { %v42_v20 = vld [vmem:[%s1531_s1 + $0x40] sm:$0xff]  ;;  %v60_v23 = vld [vmem:[%s1529_s2 + $0x50] sm:$0xff]  ;;  %v45_v25 = vld [vmem:[%s1531_s1 + $0x58] sm:$0xff] }
   0x9   :  { %1074 = vmatmul.mubr.msk.f32.gmra.mrb[2].mxu0 %vm146_vm0, %v37_v9  ;;  %v44_v24 = vld [vmem:[%s1531_s1 + $0x50] sm:$0xff]  ;;  %v63_v26 = vld [vmem:[%s1529_s2 + $0x68] sm:$0xff]  ;;  %v62_v27 = vld [vmem:[%s1529_s2 + $0x60] sm:$0xff] }
   0xa   :  { %93 = vperm.xlu1 %1182, %v55_v10   ;;  %88 = vperm.xlu0 %1181, %v54_v11   ;;  %v46_v28 = vld [vmem:[%s1531_s1 + $0x60] sm:$0xff]  ;;  %v47_v29 = vld [vmem:[%s1531_s1 + $0x68] sm:$0xff]  ;;  %v65_v30 = vld [vmem:[%s1529_s2 + $0x78] sm:$0xff] }
   0xb   :  { %1076 = vmatprep.mubr.msk.f32.mxu0 %vm146_vm0, %v38_v12  ;;  %v64_v31 = vld [vmem:[%s1529_s2 + $0x70] sm:$0xff]  ;;  %v49_v33 = vld [vmem:[%s1531_s1 + $0x78] sm:$0xff]  ;;  %v381_v34 = vld [vmem:[%s1532_s4 + $0x8] sm:$0xff] }
   0xc   :  { %v48_v32 = vld [vmem:[%s1531_s1 + $0x70] sm:$0xff]  ;;  %v380_v35 = vld [vmem:[%s1532_s4] sm:$0xff]  ;;  %v383_v36 = vld [vmem:[%s1532_s4 + $0x18] sm:$0xff] }
   0xd   :  { %1077 = vmatmul.mubr.msk.f32.gmra.mrb[4].mxu0 %vm146_vm0, %v39_v13  ;;  %v382_v37 = vld [vmem:[%s1532_s4 + $0x10] sm:$0xff]  ;;  %v385_v38 = vld [vmem:[%s1532_s4 + $0x28] sm:$0xff]  ;;  %v384_v39 = vld [vmem:[%s1532_s4 + $0x20] sm:$0xff] }
   0xe   :  { %103 = vperm.xlu1 %1182, %v57_v14   ;;  %98 = vperm.xlu0 %1181, %v56_v15   ;;  %v387_v40 = vld [vmem:[%s1532_s4 + $0x38] sm:$0xff]  ;;  %v386_v41 = vld [vmem:[%s1532_s4 + $0x30] sm:$0xff]  ;;  %v389_v42 = vld [vmem:[%s1532_s4 + $0x48] sm:$0xff] }
   0xf   :  { %1079 = vmatprep.mubr.msk.f32.mxu0 %vm146_vm0, %v40_v16  ;;  %v388_v43 = vld [vmem:[%s1532_s4 + $0x40] sm:$0xff]  ;;  %v391_v44 = vld [vmem:[%s1532_s4 + $0x58] sm:$0xff]  ;;  %v390_v45 = vld [vmem:[%s1532_s4 + $0x50] sm:$0xff] }
  0x10   :  { %v393_v46 = vld [vmem:[%s1532_s4 + $0x68] sm:$0xff]  ;;  %v392_v47 = vld [vmem:[%s1532_s4 + $0x60] sm:$0xff]  ;;  %v395_v48 = vld [vmem:[%s1532_s4 + $0x78] sm:$0xff] }
  0x11   :  { %1080 = vmatmul.mubr.msk.f32.gmra.mrb[6].mxu0 %vm146_vm0, %v41_v17  ;;  %v394_v49 = vld [vmem:[%s1532_s4 + $0x70] sm:$0xff]  ;;  %v662_v50 = vld [vmem:[%s1533_s6 + $0x8] sm:$0xff]  ;;  %v661_v51 = vld [vmem:[%s1533_s6] sm:$0xff] }
  0x12   :  { %113 = vperm.xlu1 %1182, %v59_v18   ;;  %108 = vperm.xlu0 %1181, %v58_v19   ;;  %v664_v52 = vld [vmem:[%s1533_s6 + $0x18] sm:$0xff]  ;;  %v663_v53 = vld [vmem:[%s1533_s6 + $0x10] sm:$0xff]  ;;  %v666_v54 = vld [vmem:[%s1533_s6 + $0x28] sm:$0xff] }
  0x13   :  { %1082 = vmatprep.mubr.msk.f32.mxu0 %vm146_vm0, %v42_v20  ;;  %v665_v55 = vld [vmem:[%s1533_s6 + $0x20] sm:$0xff]  ;;  %v668_v56 = vld [vmem:[%s1533_s6 + $0x38] sm:$0xff]  ;;  %v667_v57 = vld [vmem:[%s1533_s6 + $0x30] sm:$0xff] }
  0x14   :  { %v670_v58 = vld [vmem:[%s1533_s6 + $0x48] sm:$0xff]  ;;  %v669_v59 = vld [vmem:[%s1533_s6 + $0x40] sm:$0xff]  ;;  %v672_v60 = vld [vmem:[%s1533_s6 + $0x58] sm:$0xff] }
  0x15   :  { %1083 = vmatmul.mubr.msk.f32.gmra.mrb[8].mxu0 %vm146_vm0, %v43_v21  ;;  %v671_v61 = vld [vmem:[%s1533_s6 + $0x50] sm:$0xff]  ;;  %v674_v62 = vld [vmem:[%s1533_s6 + $0x68] sm:$0xff]  ;;  %v673_v63 = vld [vmem:[%s1533_s6 + $0x60] sm:$0xff] }
  0x16   :  { %123 = vperm.xlu1 %1182, %v61_v22   ;;  %118 = vperm.xlu0 %1181, %v60_v23   ;;  %v676_v0 = vld [vmem:[%s1533_s6 + $0x78] sm:$0xff]  ;;  %v675_v1 = vld [vmem:[%s1533_s6 + $0x70] sm:$0xff]  ;;  %v927_v2 = vld [vmem:[%s1534_s8] sm:$0x3] }
  0x17   :  { %1085 = vmatprep.mubr.msk.f32.mxu0 %vm146_vm0, %v44_v24  ;;  %v1183_v3 = vld [vmem:[%s1535_s3] sm:$0xff]  }
  0x18   :  { %1110 = vmatprep.mubr.bf16.mxu1 %v1183_v3 }
  0x19   :  { %1086 = vmatmul.mubr.msk.f32.gmra.mrb[10].mxu0 %vm146_vm0, %v45_v25 }
  0x1a   :  { %133 = vperm.xlu1 %1182, %v63_v26   ;;  %128 = vperm.xlu0 %1181, %v62_v27  }
  0x1b   :  { %1088 = vmatprep.mubr.msk.f32.mxu0 %vm146_vm0, %v46_v28 }
  0x1d   :  { %1089 = vmatmul.mubr.msk.f32.gmra.mrb[12].mxu0 %vm146_vm0, %v47_v29 }
  0x1e   :  { %143 = vperm.xlu1 %1182, %v65_v30   ;;  %138 = vperm.xlu0 %1181, %v64_v31  }
  0x1f   :  { %1091 = vmatprep.mubr.msk.f32.mxu0 %vm146_vm0, %v48_v32 }
  0x21   :  { %1092 = vmatmul.mubr.msk.f32.gmra.mrb[14].mxu0 %vm146_vm0, %v49_v33 }
  0x22   :  { %403 = vperm.xlu1 %1182, %v381_v34   ;;  %398 = vperm.xlu0 %1181, %v380_v35  }
  0x26   :  { %413 = vperm.xlu1 %1182, %v383_v36   ;;  %408 = vperm.xlu0 %1181, %v382_v37  }
  0x2a   :  { %423 = vperm.xlu1 %1182, %v385_v38   ;;  %418 = vperm.xlu0 %1181, %v384_v39  }
  0x2e   :  { %433 = vperm.xlu1 %1182, %v387_v40   ;;  %428 = vperm.xlu0 %1181, %v386_v41  }
  0x32   :  { %443 = vperm.xlu1 %1182, %v389_v42   ;;  %438 = vperm.xlu0 %1181, %v388_v43  }
  0x36   :  { %453 = vperm.xlu1 %1182, %v391_v44   ;;  %448 = vperm.xlu0 %1181, %v390_v45  }
  0x3a   :  { %463 = vperm.xlu1 %1182, %v393_v46   ;;  %458 = vperm.xlu0 %1181, %v392_v47  }
  0x3e   :  { %473 = vperm.xlu1 %1182, %v395_v48   ;;  %468 = vperm.xlu0 %1181, %v394_v49  }
  0x42   :  { %684 = vperm.xlu1 %1182, %v662_v50   ;;  %679 = vperm.xlu0 %1181, %v661_v51  }
  0x46   :  { %694 = vperm.xlu1 %1182, %v664_v52   ;;  %689 = vperm.xlu0 %1181, %v663_v53  }
  0x4a   :  { %704 = vperm.xlu1 %1182, %v666_v54   ;;  %699 = vperm.xlu0 %1181, %v665_v55  }
  0x4e   :  { %714 = vperm.xlu1 %1182, %v668_v56   ;;  %709 = vperm.xlu0 %1181, %v667_v57  }
  0x52   :  { %724 = vperm.xlu1 %1182, %v670_v58   ;;  %719 = vperm.xlu0 %1181, %v669_v59  }
  0x56   :  { %734 = vperm.xlu1 %1182, %v672_v60   ;;  %729 = vperm.xlu0 %1181, %v671_v61  }
  0x5a   :  { %744 = vperm.xlu1 %1182, %v674_v62   ;;  %739 = vperm.xlu0 %1181, %v673_v63  }
  0x5e   :  { %754 = vperm.xlu1 %1182, %v676_v0   ;;  %749 = vperm.xlu0 %1181, %v675_v1  }
  0x62   :  { %930 = vperm.xlu0 %1181, %v927_v2  }
  0x81   :  { %v79_v4 = vpop.permute.xlu1 %78  ;;  %v69_v5 = vpop.permute.xlu0 %68 }
  0x85   :  { %v84_v6 = vpop.permute.xlu1 %83  ;;  %v74_v7 = vpop.permute.xlu0 %73 }
  0x89   :  { %v94_v8 = vpop.permute.xlu1 %93  ;;  %v89_v9 = vpop.permute.xlu0 %88 }
  0x8d   :  { %v104_v15 = vpop.permute.xlu1 %103  ;;  %v99_v18 = vpop.permute.xlu0 %98 }
  0x91   :  { %v114_v28 = vpop.permute.xlu1 %113  ;;  %v109_v31 = vpop.permute.xlu0 %108 }
  0x95   :  { %v124_v40 = vpop.permute.xlu1 %123  ;;  %v119_v43 = vpop.permute.xlu0 %118 }
  0x99   :  { %v134_v53 = vpop.permute.xlu1 %133  ;;  %v129_v56 = vpop.permute.xlu0 %128 }
  0x9d   :  { %v144_v1 = vpop.permute.xlu1 %143 }
  0xd8   :  { %v1072_v10 = vpop.f32.mrb[0].mxu0 }
  0xd9   :  { %v267_v11 = vadd.f32 %v1072_v10, %v74_v7  ;;  %v261_v12 = vpop.f32.mrb[1].mxu0 }
  0xda   :  { %v262_v13 = vadd.f32 %v261_v12, %v69_v5  ;;  %v1184_v12 = vld [vmem:[%s1535_s3 + $0x8] sm:$0xff]  }
  0xdb   :  { %v341_v14 = vmax.f32 %v267_v11, 0.0 }
  0xdc   :  { %v340_v16 = vmax.f32 %v262_v13, 0.0  ;;  %v1075_v17 = vpop.f32.mrb[2].mxu0  ;;  %v1185_v13 = vld [vmem:[%s1535_s3 + $0x10] sm:$0xff]  }
  0xdd   :  { %v277_v19 = vadd.f32 %v1075_v17, %v84_v6  ;;  %v271_v20 = vpop.f32.mrb[3].mxu0  ;;  %v1189_v17 = vld [vmem:[%s1535_s3 + $0x30] sm:$0xff]  }
  0xde   :  { %v272_v21 = vadd.f32 %v271_v20, %v79_v4  ;;  %v372_v22 = vpack.c.bf16 %v341_v14, %v340_v16  ;;  %v139_v4 = vpop.permute.xlu0 %138  ;;  %v1186_v14 = vld [vmem:[%s1535_s3 + $0x18] sm:$0xff]   ;;  %v1188_v16 = vld [vmem:[%s1535_s3 + $0x28] sm:$0xff]  }
  0xdf   :  { %v343_v23 = vmax.f32 %v277_v19, 0.0  ;;  %v1191_v19 = vld [vmem:[%s1536_s5] sm:$0xff]  }
  0xe0   :  { %v342_v24 = vmax.f32 %v272_v21, 0.0  ;;  %v1078_v25 = vpop.f32.mrb[4].mxu0  ;;  %1094 = vmatprep.subr.bf16.mxu1 %v372_v22  ;;  %1142 = vmatprep.mubr.bf16.mxu0 %v1191_v19  ;;  %v404_v21 = vpop.permute.xlu1 %403 }
  0xe1   :  { %v287_v26 = vadd.f32 %v1078_v25, %v94_v8  ;;  %v281_v27 = vpop.f32.mrb[5].mxu0  ;;  %1095 = vmatpush3.bf16.msra.mxu1 %v372_v22 }
  0xe2   :  { %v373_v29 = vpack.c.bf16 %v343_v23, %v342_v24  ;;  %v282_v30 = vadd.f32 %v281_v27, %v89_v9  ;;  %v399_v20 = vpop.permute.xlu0 %398 }
  0xe3   :  { %v345_v32 = vmax.f32 %v287_v26, 0.0 }
  0xe4   :  { %v344_v33 = vmax.f32 %v282_v30, 0.0  ;;  %v1081_v34 = vpop.f32.mrb[6].mxu0  ;;  %1096 = vmatprep.subr.bf16.mxu1 %v373_v29  ;;  %v414_v23 = vpop.permute.xlu1 %413 }
  0xe5   :  { %v297_v35 = vadd.f32 %v1081_v34, %v104_v15  ;;  %v291_v36 = vpop.f32.mrb[7].mxu0  ;;  %1097 = vmatpush3.bf16.msra.mxu1 %v373_v29  ;;  %v1187_v15 = vld [vmem:[%s1535_s3 + $0x20] sm:$0xff]  }
  0xe6   :  { %v374_v37 = vpack.c.bf16 %v345_v32, %v344_v33  ;;  %v292_v38 = vadd.f32 %v291_v36, %v99_v18  ;;  %v1190_v18 = vld [vmem:[%s1535_s3 + $0x38] sm:$0xff]   ;;  %v409_v22 = vpop.permute.xlu0 %408 }
  0xe7   :  { %v347_v39 = vmax.f32 %v297_v35, 0.0 }
  0xe8   :  { %v346_v41 = vmax.f32 %v292_v38, 0.0  ;;  %v1084_v42 = vpop.f32.mrb[8].mxu0  ;;  %1098 = vmatprep.subr.bf16.mxu1 %v374_v37  ;;  %v424_v25 = vpop.permute.xlu1 %423 }
  0xe9   :  { %v307_v44 = vadd.f32 %v1084_v42, %v114_v28  ;;  %v301_v45 = vpop.f32.mrb[9].mxu0  ;;  %1099 = vmatpush3.bf16.msra.mxu1 %v374_v37 }
  0xea   :  { %v375_v46 = vpack.c.bf16 %v347_v39, %v346_v41  ;;  %v302_v47 = vadd.f32 %v301_v45, %v109_v31  ;;  %v419_v24 = vpop.permute.xlu0 %418 }
  0xeb   :  { %v349_v48 = vmax.f32 %v307_v44, 0.0 }
  0xec   :  { %v348_v49 = vmax.f32 %v302_v47, 0.0  ;;  %v1087_v50 = vpop.f32.mrb[10].mxu0  ;;  %1100 = vmatprep.subr.bf16.mxu1 %v375_v46  ;;  %v434_v30 = vpop.permute.xlu1 %433 }
  0xed   :  { %v317_v51 = vadd.f32 %v1087_v50, %v124_v40  ;;  %v311_v52 = vpop.f32.mrb[11].mxu0  ;;  %1101 = vmatpush3.bf16.msra.mxu1 %v375_v46 }
  0xee   :  { %v376_v54 = vpack.c.bf16 %v349_v48, %v348_v49  ;;  %v312_v55 = vadd.f32 %v311_v52, %v119_v43  ;;  %v429_v26 = vpop.permute.xlu0 %428 }
  0xef   :  { %v351_v57 = vmax.f32 %v317_v51, 0.0 }
  0xf0   :  { %v350_v58 = vmax.f32 %v312_v55, 0.0  ;;  %v1090_v59 = vpop.f32.mrb[12].mxu0  ;;  %1102 = vmatprep.subr.bf16.mxu1 %v376_v54  ;;  %v444_v42 = vpop.permute.xlu1 %443 }
  0xf1   :  { %v327_v60 = vadd.f32 %v1090_v59, %v134_v53  ;;  %v321_v61 = vpop.f32.mrb[13].mxu0  ;;  %1103 = vmatpush3.bf16.msra.mxu1 %v376_v54 }
  0xf2   :  { %v377_v62 = vpack.c.bf16 %v351_v57, %v350_v58  ;;  %v322_v63 = vadd.f32 %v321_v61, %v129_v56  ;;  %v439_v38 = vpop.permute.xlu0 %438 }
  0xf3   :  { %v353_v0 = vmax.f32 %v327_v60, 0.0 }
  0xf4   :  { %v352_v2 = vmax.f32 %v322_v63, 0.0  ;;  %v1093_v3 = vpop.f32.mrb[14].mxu0  ;;  %1104 = vmatprep.subr.bf16.mxu1 %v377_v62  ;;  %v454_v55 = vpop.permute.xlu1 %453 }
  0xf5   :  { %v337_v5 = vadd.f32 %v1093_v3, %v144_v1  ;;  %v331_v6 = vpop.f32.mrb[15].mxu0  ;;  %1105 = vmatpush3.bf16.msra.mxu1 %v377_v62 }
  0xf6   :  { %v378_v7 = vpack.c.bf16 %v353_v0, %v352_v2  ;;  %v332_v8 = vadd.f32 %v331_v6, %v139_v4  ;;  %v449_v51 = vpop.permute.xlu0 %448 }
  0xf7   :  { %v355_v9 = vmax.f32 %v337_v5, 0.0 }
  0xf8   :  { %v354_v10 = vmax.f32 %v332_v8, 0.0  ;;  %1106 = vmatprep.subr.bf16.mxu1 %v378_v7  ;;  %v464_v4 = vpop.permute.xlu1 %463 }
  0xf9   :  { %1107 = vmatpush3.bf16.msra.mxu1 %v378_v7 }
  0xfa   :  { %v379_v11 = vpack.c.bf16 %v355_v9, %v354_v10  ;;  %v459_v63 = vpop.permute.xlu0 %458 }
  0xfc   :  { %1108 = vmatprep.subr.bf16.mxu1 %v379_v11 }
  0xfd   :  { %1109 = vmatpush3.bf16.msra.mxu1 %v379_v11 }
  0xfe   :  { %v469_v11 = vpop.permute.xlu0 %468 }
 0x100   :  { %1111 = vmatmul.mubr.bf16.vlgmr.msra.gmra.mrb[0].mxu1 %v1184_v12 }
 0x101   :  { %1114 = vmatprep.mubr.bf16.mxu1 %v1185_v13 }
 0x108   :  { %1115 = vmatmul.mubr.bf16.gmra.mrb[4].mxu1 %v1186_v14 }
 0x109   :  { %1118 = vmatprep.mubr.bf16.mxu1 %v1187_v15 }
 0x110   :  { %1119 = vmatmul.mubr.bf16.gmra.mrb[8].mxu1 %v1188_v16  ;;  %v474_v16 = vpop.permute.xlu1 %473 }
 0x111   :  { %1122 = vmatprep.mubr.bf16.mxu1 %v1189_v17 }
 0x118   :  { %1123 = vmatmul.mubr.bf16.gmra.mrb[12].mxu1 %v1190_v18 }
 0x1d3   :  { %v1112_v27 = vpop.f32.mrb[0].mxu1 }
 0x1d4   :  { %v567_v28 = vadd.f32 %v1112_v27, %v409_v22  ;;  %v558_v29 = vpop.f32.mrb[1].mxu1 }
 0x1d5   :  { %v559_v31 = vadd.f32 %v558_v29, %v399_v20  ;;  %v1113_v32 = vpop.f32.mrb[2].mxu1  ;;  %v1193_v29 = vld [vmem:[%s1536_s5 + $0x10] sm:$0xff]  }
 0x1d6   :  { %v570_v33 = vadd.f32 %v1113_v32, %v414_v23  ;;  %v561_v34 = vpop.f32.mrb[3].mxu1  ;;  %v623_v36 = vmax.f32 %v567_v28, 0.0  ;;  %v1192_v28 = vld [vmem:[%s1536_s5 + $0x8] sm:$0xff]  }
 0x1d7   :  { %v562_v35 = vadd.f32 %v561_v34, %v404_v21  ;;  %v621_v39 = vmax.f32 %v559_v31, 0.0  ;;  %v1195_v31 = vld [vmem:[%s1536_s5 + $0x20] sm:$0xff]   ;;  %v1196_v32 = vld [vmem:[%s1536_s5 + $0x28] sm:$0xff]   ;;  %v1198_v34 = vld [vmem:[%s1536_s5 + $0x38] sm:$0xff]  }
 0x1d8   :  { %v624_v37 = vmax.f32 %v570_v33, 0.0  ;;  %v1197_v33 = vld [vmem:[%s1536_s5 + $0x30] sm:$0xff]  }
 0x1d9   :  { %v622_v40 = vmax.f32 %v562_v35, 0.0  ;;  %v1200_v35 = vmov 0.0  }
 0x1da   :  { %v654_v41 = vpack.c.bf16 %v624_v37, %v623_v36  ;;  %1158 = vmatprep.subr.bf16.mxu1 %v1200_v35  ;;  %1174 = vmatprep.mubr.msk.bf16.mxu1 %vm1201_vm1, %v1200_v35  ;;  %v680_v36 = vpop.permute.xlu0 %679  ;;  %v685_v37 = vpop.permute.xlu1 %684 }
 0x1db   :  { %v653_v43 = vpack.c.bf16 %v622_v40, %v621_v39  ;;  %v1116_v44 = vpop.f32.mrb[4].mxu1 }
 0x1dc   :  { %v583_v45 = vadd.f32 %v1116_v44, %v429_v26  ;;  %v574_v46 = vpop.f32.mrb[5].mxu1 }
 0x1dd   :  { %v575_v47 = vadd.f32 %v574_v46, %v419_v24  ;;  %v1117_v48 = vpop.f32.mrb[6].mxu1  ;;  %1126 = vmatprep.subr.bf16.mxu0 %v653_v43 }
 0x1de   :  { %v586_v49 = vadd.f32 %v1117_v48, %v434_v30  ;;  %v577_v50 = vpop.f32.mrb[7].mxu1  ;;  %1127 = vmatpush3.bf16.msra.mxu0 %v653_v43  ;;  %v627_v53 = vmax.f32 %v583_v45, 0.0  ;;  %v1194_v30 = vld [vmem:[%s1536_s5 + $0x18] sm:$0xff]   ;;  %v695_v39 = vpop.permute.xlu1 %694 }
 0x1df   :  { %v578_v52 = vadd.f32 %v577_v50, %v424_v25  ;;  %1128 = vmatprep.subr.bf16.mxu0 %v654_v41  ;;  %v625_v56 = vmax.f32 %v575_v47, 0.0 }
 0x1e0   :  { %v628_v54 = vmax.f32 %v586_v49, 0.0 }
 0x1e1   :  { %v626_v57 = vmax.f32 %v578_v52, 0.0 }
 0x1e2   :  { %v656_v58 = vpack.c.bf16 %v628_v54, %v627_v53  ;;  %1129 = vmatpush3.bf16.msra.mxu0 %v654_v41  ;;  %v705_v41 = vpop.permute.xlu1 %704 }
 0x1e3   :  { %v655_v59 = vpack.c.bf16 %v626_v57, %v625_v56  ;;  %v1120_v60 = vpop.f32.mrb[8].mxu1 }
 0x1e4   :  { %v599_v61 = vadd.f32 %v1120_v60, %v449_v51  ;;  %v590_v62 = vpop.f32.mrb[9].mxu1 }
 0x1e5   :  { %v591_v0 = vadd.f32 %v590_v62, %v439_v38  ;;  %v1121_v1 = vpop.f32.mrb[10].mxu1  ;;  %1130 = vmatprep.subr.bf16.mxu0 %v655_v59  ;;  %v690_v38 = vpop.permute.xlu0 %689 }
 0x1e6   :  { %v602_v2 = vadd.f32 %v1121_v1, %v454_v55  ;;  %v593_v3 = vpop.f32.mrb[11].mxu1  ;;  %1131 = vmatpush3.bf16.msra.mxu0 %v655_v59  ;;  %v631_v6 = vmax.f32 %v599_v61, 0.0  ;;  %v715_v46 = vpop.permute.xlu1 %714 }
 0x1e7   :  { %v594_v5 = vadd.f32 %v593_v3, %v444_v42  ;;  %1132 = vmatprep.subr.bf16.mxu0 %v656_v58  ;;  %v629_v8 = vmax.f32 %v591_v0, 0.0 }
 0x1e8   :  { %v632_v7 = vmax.f32 %v602_v2, 0.0 }
 0x1e9   :  { %v630_v9 = vmax.f32 %v594_v5, 0.0  ;;  %v700_v40 = vpop.permute.xlu0 %699 }
 0x1ea   :  { %v658_v10 = vpack.c.bf16 %v632_v7, %v631_v6  ;;  %1133 = vmatpush3.bf16.msra.mxu0 %v656_v58  ;;  %v725_v58 = vpop.permute.xlu1 %724 }
 0x1eb   :  { %v657_v12 = vpack.c.bf16 %v630_v9, %v629_v8  ;;  %v1124_v13 = vpop.f32.mrb[12].mxu1 }
 0x1ec   :  { %v615_v14 = vadd.f32 %v1124_v13, %v469_v11  ;;  %v606_v15 = vpop.f32.mrb[13].mxu1 }
 0x1ed   :  { %v607_v17 = vadd.f32 %v606_v15, %v459_v63  ;;  %v1125_v18 = vpop.f32.mrb[14].mxu1  ;;  %1134 = vmatprep.subr.bf16.mxu0 %v657_v12  ;;  %v710_v42 = vpop.permute.xlu0 %709 }
 0x1ee   :  { %v618_v19 = vadd.f32 %v1125_v18, %v474_v16  ;;  %v609_v20 = vpop.f32.mrb[15].mxu1  ;;  %1135 = vmatpush3.bf16.msra.mxu0 %v657_v12  ;;  %v635_v22 = vmax.f32 %v615_v14, 0.0  ;;  %v735_v7 = vpop.permute.xlu1 %734 }
 0x1ef   :  { %v610_v21 = vadd.f32 %v609_v20, %v464_v4  ;;  %1136 = vmatprep.subr.bf16.mxu0 %v658_v10  ;;  %v633_v24 = vmax.f32 %v607_v17, 0.0 }
 0x1f0   :  { %v636_v23 = vmax.f32 %v618_v19, 0.0 }
 0x1f1   :  { %v634_v25 = vmax.f32 %v610_v21, 0.0  ;;  %v720_v54 = vpop.permute.xlu0 %719 }
 0x1f2   :  { %v660_v26 = vpack.c.bf16 %v636_v23, %v635_v22  ;;  %1137 = vmatpush3.bf16.msra.mxu0 %v658_v10  ;;  %v745_v20 = vpop.permute.xlu1 %744 }
 0x1f3   :  { %v659_v27 = vpack.c.bf16 %v634_v25, %v633_v24 }
 0x1f5   :  { %1138 = vmatprep.subr.bf16.mxu0 %v659_v27  ;;  %v730_v3 = vpop.permute.xlu0 %729 }
 0x1f6   :  { %1139 = vmatpush3.bf16.msra.mxu0 %v659_v27 }
 0x1f7   :  { %1140 = vmatprep.subr.bf16.mxu0 %v660_v26 }
 0x1f9   :  { %v740_v15 = vpop.permute.xlu0 %739 }
 0x1fa   :  { %1141 = vmatpush3.bf16.msra.mxu0 %v660_v26 }
 0x1fd   :  { %1143 = vmatmul.mubr.bf16.vlgmr.msra.gmra.mrb[16].mxu0 %v1192_v28  ;;  %v750_v27 = vpop.permute.xlu0 %749 }
 0x1fe   :  { %1146 = vmatprep.mubr.bf16.mxu0 %v1193_v29 }
 0x205   :  { %1147 = vmatmul.mubr.bf16.gmra.mrb[20].mxu0 %v1194_v30 }
 0x206   :  { %1150 = vmatprep.mubr.bf16.mxu0 %v1195_v31 }
 0x20d   :  { %1151 = vmatmul.mubr.bf16.gmra.mrb[24].mxu0 %v1196_v32  ;;  %v755_v32 = vpop.permute.xlu1 %754 }
 0x20e   :  { %1154 = vmatprep.mubr.bf16.mxu0 %v1197_v33 }
 0x215   :  { %1155 = vmatmul.mubr.bf16.gmra.mrb[28].mxu0 %v1198_v34 }
 0x2d0   :  { %v1144_v43 = vpop.f32.mrb[16].mxu0 }
 0x2d1   :  { %v848_v44 = vadd.f32 %v1144_v43, %v690_v38  ;;  %v839_v45 = vpop.f32.mrb[17].mxu0 }
 0x2d2   :  { %v840_v47 = vadd.f32 %v839_v45, %v680_v36  ;;  %v1145_v48 = vpop.f32.mrb[18].mxu0  ;;  %v918_v45 = vld [vmem:[%s1537_s7] sm:$0x1] }
 0x2d3   :  { %v851_v49 = vadd.f32 %v1145_v48, %v695_v39  ;;  %v842_v50 = vpop.f32.mrb[19].mxu0  ;;  %v904_v52 = vmax.f32 %v848_v44, 0.0 }
 0x2d4   :  { %v843_v51 = vadd.f32 %v842_v50, %v685_v37  ;;  %v902_v55 = vmax.f32 %v840_v47, 0.0 }
 0x2d5   :  { %v905_v53 = vmax.f32 %v851_v49, 0.0 }
 0x2d6   :  { %v903_v56 = vmax.f32 %v843_v51, 0.0 }
 0x2d7   :  { %v920_v57 = vpack.c.bf16 %v905_v53, %v904_v52 }
 0x2d8   :  { %v919_v59 = vpack.c.bf16 %v903_v56, %v902_v55  ;;  %v1148_v60 = vpop.f32.mrb[20].mxu0 }
 0x2d9   :  { %v864_v61 = vadd.f32 %v1148_v60, %v710_v42  ;;  %v855_v62 = vpop.f32.mrb[21].mxu0 }
 0x2da   :  { %v856_v63 = vadd.f32 %v855_v62, %v700_v40  ;;  %v1149_v0 = vpop.f32.mrb[22].mxu0  ;;  %1159 = vmatpush3.bf16.msra.mxu1 %v919_v59 }
 0x2db   :  { %v867_v1 = vadd.f32 %v1149_v0, %v715_v46  ;;  %v858_v2 = vpop.f32.mrb[23].mxu0  ;;  %1160 = vmatprep.subr.bf16.mxu1 %v1200_v35  ;;  %v908_v5 = vmax.f32 %v864_v61, 0.0  ;;  %v931_v46 = vpop.permute.xlu0 %930 }
 0x2dc   :  { %v859_v4 = vadd.f32 %v858_v2, %v705_v41  ;;  %v906_v8 = vmax.f32 %v856_v63, 0.0 }
 0x2dd   :  { %v909_v6 = vmax.f32 %v867_v1, 0.0 }
 0x2de   :  { %v907_v9 = vmax.f32 %v859_v4, 0.0  ;;  %1161 = vmatpush3.bf16.msra.mxu1 %v920_v57 }
 0x2df   :  { %v922_v10 = vpack.c.bf16 %v909_v6, %v908_v5  ;;  %1162 = vmatprep.subr.bf16.mxu1 %v1200_v35 }
 0x2e0   :  { %v921_v11 = vpack.c.bf16 %v907_v9, %v906_v8  ;;  %v1152_v12 = vpop.f32.mrb[24].mxu0 }
 0x2e1   :  { %v880_v13 = vadd.f32 %v1152_v12, %v730_v3  ;;  %v871_v14 = vpop.f32.mrb[25].mxu0 }
 0x2e2   :  { %v872_v16 = vadd.f32 %v871_v14, %v720_v54  ;;  %v1153_v17 = vpop.f32.mrb[26].mxu0  ;;  %1163 = vmatpush3.bf16.msra.mxu1 %v921_v11 }
 0x2e3   :  { %v883_v18 = vadd.f32 %v1153_v17, %v735_v7  ;;  %v874_v19 = vpop.f32.mrb[27].mxu0  ;;  %1164 = vmatprep.subr.bf16.mxu1 %v1200_v35  ;;  %v912_v22 = vmax.f32 %v880_v13, 0.0 }
 0x2e4   :  { %v875_v21 = vadd.f32 %v874_v19, %v725_v58  ;;  %v910_v24 = vmax.f32 %v872_v16, 0.0 }
 0x2e5   :  { %v913_v23 = vmax.f32 %v883_v18, 0.0 }
 0x2e6   :  { %v911_v25 = vmax.f32 %v875_v21, 0.0  ;;  %1165 = vmatpush3.bf16.msra.mxu1 %v922_v10 }
 0x2e7   :  { %v924_v26 = vpack.c.bf16 %v913_v23, %v912_v22  ;;  %1166 = vmatprep.subr.bf16.mxu1 %v1200_v35 }
 0x2e8   :  { %v923_v28 = vpack.c.bf16 %v911_v25, %v910_v24  ;;  %v1156_v29 = vpop.f32.mrb[28].mxu0 }
 0x2e9   :  { %v896_v30 = vadd.f32 %v1156_v29, %v750_v27  ;;  %v887_v31 = vpop.f32.mrb[29].mxu0 }
 0x2ea   :  { %v888_v33 = vadd.f32 %v887_v31, %v740_v15  ;;  %v1157_v34 = vpop.f32.mrb[30].mxu0  ;;  %1167 = vmatpush3.bf16.msra.mxu1 %v923_v28 }
 0x2eb   :  { %v899_v36 = vadd.f32 %v1157_v34, %v755_v32  ;;  %v890_v37 = vpop.f32.mrb[31].mxu0  ;;  %1168 = vmatprep.subr.bf16.mxu1 %v1200_v35  ;;  %v916_v39 = vmax.f32 %v896_v30, 0.0 }
 0x2ec   :  { %v891_v38 = vadd.f32 %v890_v37, %v745_v20  ;;  %v914_v41 = vmax.f32 %v888_v33, 0.0 }
 0x2ed   :  { %v917_v40 = vmax.f32 %v899_v36, 0.0 }
 0x2ee   :  { %v915_v42 = vmax.f32 %v891_v38, 0.0  ;;  %1169 = vmatpush3.bf16.msra.mxu1 %v924_v26 }
 0x2ef   :  { %v926_v43 = vpack.c.bf16 %v917_v40, %v916_v39  ;;  %1170 = vmatprep.subr.bf16.mxu1 %v1200_v35 }
 0x2f0   :  { %v925_v44 = vpack.c.bf16 %v915_v42, %v914_v41 }
 0x2f2   :  { %1171 = vmatpush3.bf16.msra.mxu1 %v925_v44 }
 0x2f3   :  { %1172 = vmatprep.subr.bf16.mxu1 %v1200_v35 }
 0x2f6   :  { %1173 = vmatpush3.bf16.msra.mxu1 %v926_v43 }
 0x2f9   :  { %1175 = vmatmul.mubr.bf16.vlgmr.msra.gmra.mrb[16].mxu1 %v918_v45 }
 0x3cc   :  { %v967_v47 = vpop.f32.mrb[16].mxu1 }
 0x3cd   :  { %v968_v48 = vadd.f32 %v967_v47, %v931_v46  ;;  %v1176_v49 = vpop.f32.mrb[17].mxu1 }
 0x3ce   :  { %v970_v50 = vpop.f32.mrb[18].mxu1 }
 0x3cf   :  { %973 = vst [vmem:[%s1538_s9] sm:$0x3] %v968_v48  ;;  %v1177_v51 = vpop.f32.mrb[19].mxu1 }

</bundles_post_ra>
